<compile_context>
chip_gen: v7x
topology: tpu7x:2x2x1
jax: 0.10.0
libtpu: 0.0.40
codegen_flags: <defaults>
</compile_context>

<pallas_src>
import jax
import jax.numpy as jnp
from jax.experimental import pallas as pl
from jax.experimental.pallas import tpu as pltpu

N_IN = 1
C_IN = 1056
C_OUT = 44


def conv1x1_kernel(x_ref, w_ref, b_ref, o_ref):
    # x_ref: (1, 1056) f32    w_ref: (1056, 44) bf16
    # b_ref: (1, 44)   f32    o_ref: (1, 44)    f32
    x_bf16 = x_ref[...].astype(jnp.bfloat16)
    acc = jnp.dot(x_bf16, w_ref[...], preferred_element_type=jnp.float32)
    o_ref[...] = (acc + b_ref[...]).astype(o_ref.dtype)


def prepare_conv_params(weight, bias):
    """One-time parameter prep (NOT on the per-call path).

    Converts the PyTorch-layout weight (Cout, Cin, 1, 1) into the true
    (Cin, Cout) matrix, cast to bfloat16 (the dot accumulates in f32 in the
    kernel). Bias stays f32, reshaped to (1, Cout).
    """
    cout, cin = weight.shape[0], weight.shape[1]
    w2d = weight.reshape(cout, cin).T.astype(jnp.bfloat16)   # (Cin, Cout) bf16
    b2d = bias.reshape(1, cout).astype(jnp.float32)           # (1, Cout) f32
    return w2d, b2d


@jax.jit
def conv2d_1x1(x_nchw, w2d, b2d):
    """x_nchw: (1, 1056, 1, 1) f32; w2d: (1056, 44) bf16; b2d: (1, 44) f32."""
    n, cin, h, w = x_nchw.shape
    assert h == 1 and w == 1 and n == N_IN and cin == C_IN, \
        "this kernel specializes the (1, 1056, 1, 1) case of the module"

    x2d = x_nchw.reshape(n, cin)   # (1, 1056), no padding

    flops = 2 * N_IN * C_IN * C_OUT
    bytes_accessed = (
        4 * N_IN * C_IN          # x (f32)
        + 2 * C_IN * C_OUT       # w (bf16)
        + 4 * C_OUT              # bias (f32)
        + 4 * N_IN * C_OUT       # out (f32)
    )

    out = pl.pallas_call(
        conv1x1_kernel,
        out_shape=jax.ShapeDtypeStruct((N_IN, C_OUT), x_nchw.dtype),
        # Grid-less single invocation: whole (tiny) operands resident in VMEM,
        # no double-buffering or pipeline prologue for a one-step "loop".
        # Full-array blocks are legal: sublane dims (1, 1056) are either full
        # extent or divisible by 8; lane dims equal the full array extent.
        in_specs=[
            pl.BlockSpec(memory_space=pltpu.MemorySpace.VMEM),
            pl.BlockSpec(memory_space=pltpu.MemorySpace.VMEM),
            pl.BlockSpec(memory_space=pltpu.MemorySpace.VMEM),
        ],
        out_specs=pl.BlockSpec(memory_space=pltpu.MemorySpace.VMEM),
        cost_estimate=pl.CostEstimate(
            flops=flops, transcendentals=0, bytes_accessed=bytes_accessed
        ),
    )(x2d, w2d, b2d)

    # Restore NCHW.
    return out.reshape(n, C_OUT, 1, 1)


if __name__ == "__main__":
    key = jax.random.PRNGKey(0)
    k_x, k_w, k_b = jax.random.split(key, 3)

    # Input matches the module's forward (x343 = randn([1, 1056, 1, 1])).
    x = jax.random.normal(k_x, (N_IN, C_IN, 1, 1), dtype=jnp.float32)

    # Deterministic parameter init matching PyTorch Conv2d defaults
    # (uniform in +/- 1/sqrt(fan_in), fan_in = Cin * 1 * 1).
    bound = 1.0 / jnp.sqrt(jnp.float32(C_IN))
    weight = jax.random.uniform(
        k_w, (C_OUT, C_IN, 1, 1), minval=-bound, maxval=bound, dtype=jnp.float32
    )
    bias = jax.random.uniform(
        k_b, (C_OUT,), minval=-bound, maxval=bound, dtype=jnp.float32
    )

    # One-time parameter prep (off the per-call path).
    w2d, b2d = prepare_conv_params(weight, bias)
    w2d = jax.block_until_ready(w2d)
    b2d = jax.block_until_ready(b2d)

    out = conv2d_1x1(x, w2d, b2d)
    out = jax.block_until_ready(out)

    # Sanity check against a plain-JAX f32 reference of the original module.
    # Tolerance is loosened vs. the f32 version because the weight is stored
    # in bfloat16 (f32 accumulation in the kernel); deviation from PyTorch
    # f32 numerics is ~1e-3 relative over K=1056.
    ref = (x.reshape(N_IN, C_IN) @ weight.reshape(C_OUT, C_IN).T + bias).reshape(
        N_IN, C_OUT, 1, 1
    )
    assert out.shape == (N_IN, C_OUT, 1, 1)
    assert jnp.allclose(out, ref, atol=5e-3, rtol=1e-2)

    print("KERNEL_OK")
</pallas_src>

<mosaic_0001>
module attributes {stable_mosaic.version = 11 : i64} {
  func.func @conv1x1_kernel(%arg0: memref<1x1056xf32, #tpu.memory_space<vmem>>, %arg1: memref<1056x44xbf16, #tpu.memory_space<vmem>>, %arg2: memref<1x44xf32, #tpu.memory_space<vmem>>, %arg3: memref<1x44xf32, #tpu.memory_space<vmem>>) attributes {dimension_semantics = [], scalar_prefetch = 0 : i64, scratch_operands = 0 : i64, tpu.core_type = #tpu.core_type<tc>} {
    %c0 = arith.constant 0 : index
    %c0_0 = arith.constant 0 : index
    %0 = vector.load %arg0[%c0, %c0_0] : memref<1x1056xf32, #tpu.memory_space<vmem>>, vector<1x1056xf32>
    %1 = arith.truncf %0 : vector<1x1056xf32> to vector<1x1056xbf16>
    %c0_1 = arith.constant 0 : index
    %c0_2 = arith.constant 0 : index
    %2 = vector.load %arg1[%c0_1, %c0_2] : memref<1056x44xbf16, #tpu.memory_space<vmem>>, vector<1056x44xbf16>
    %cst = arith.constant dense<0.000000e+00> : vector<1x44xf32>
    %3 = tpu.matmul %1, %2, %cst {dimension_numbers = #tpu.dot_dimension_numbers<[1], [0], [0], [1], [0, 0, 1, 1], [], []>} : vector<1x1056xbf16>, vector<1056x44xbf16>, vector<1x44xf32> -> vector<1x44xf32>
    %c0_3 = arith.constant 0 : index
    %c0_4 = arith.constant 0 : index
    %4 = vector.load %arg2[%c0_3, %c0_4] : memref<1x44xf32, #tpu.memory_space<vmem>>, vector<1x44xf32>
    %5 = arith.addf %3, %4 : vector<1x44xf32>
    %c0_5 = arith.constant 0 : index
    %c0_6 = arith.constant 0 : index
    %6 = vector.load %arg3[%c0_5, %c0_6] : memref<1x44xf32, #tpu.memory_space<vmem>>, vector<1x44xf32>
    tpu.vector_store %arg3[%c0_5, %c0_6], %5 {strides = array<i32>} : memref<1x44xf32, #tpu.memory_space<vmem>>, vector<1x44xf32>,
    return
  }
}

</mosaic_0001>

<bundles_post_ra>
// kernel: conv2d_1x1.1
= control target key start
LH: loop header
LB: loop body
LE: loop exit
PB: predicated region body
PF: predicated region fallthrough
CT: control target
= control target key end

     0   :  { %v20_v18 = vlaneseq  ;;  %s1345_s0 = inlined_call_operand.vmem [shape: f32[1,1056], index: 0, kind: input, shape index: {}]   ;;  %s1346_s1 = inlined_call_operand.vmem [shape: bf16[1056,44], index: 1, kind: input, shape index: {}]   ;;  %s1347_s2 = inlined_call_operand.vmem [shape: f32[1,44], index: 2, kind: input, shape index: {}]   ;;  %s1348_s3 = inlined_call_operand.hbm [shape: f32[1,44], index: 3, kind: output, shape index: {}]  }
   0x1   :  { %v993_v0 = vld [vmem:[%s1346_s1 + $0x40] sm:$0xff]   ;;  %v997_v4 = vld [vmem:[%s1346_s1 + $0x48] sm:$0xff]   ;;  %v1001_v8 = vld [vmem:[%s1346_s1 + $0x50] sm:$0xff]  }
   0x2   :  { %v994_v1 = vld [vmem:[%s1346_s1] sm:$0xff]   ;;  %891 = vmatprep.subr.bf16.mxu0 %v993_v0  ;;  %v998_v5 = vld [vmem:[%s1346_s1 + $0x8] sm:$0xff]   ;;  %v1002_v9 = vld [vmem:[%s1346_s1 + $0x10] sm:$0xff]   ;;  %v1172_v23 = vshrl.u32 %v20_v18, 7 }
   0x3   :  { %v995_v2 = vld [vmem:[%s1346_s1 + $0xc0] sm:$0xff]   ;;  %892 = vmatpush3.bf16.msra.mxu0 %v994_v1  ;;  %v999_v6 = vld [vmem:[%s1346_s1 + $0xc8] sm:$0xff]   ;;  %v1003_v10 = vld [vmem:[%s1346_s1 + $0xd0] sm:$0xff]  }
   0x4   :  { %v996_v3 = vld [vmem:[%s1346_s1 + $0x80] sm:$0xff]   ;;  %913 = vmatprep.subr.bf16.mxu1 %v995_v2  ;;  %893 = vmatprep.subr.bf16.mxu0 %v997_v4  ;;  %v1000_v7 = vld [vmem:[%s1346_s1 + $0x88] sm:$0xff]   ;;  %v1004_v11 = vld [vmem:[%s1346_s1 + $0x90] sm:$0xff]   ;;  %v26_v28 = vsub.s32 1, %v1172_v23  ;;  %v22_v30 = vsub.s32 0, %v1172_v23  ;;  %v34_v32 = vsub.s32 3, %v1172_v23 }
   0x5   :  { %914 = vmatpush3.bf16.msra.mxu1 %v996_v3  ;;  %v1005_v12 = vld [vmem:[%s1346_s1 + $0x58] sm:$0xff]   ;;  %v1009_v16 = vld [vmem:[%s1346_s1 + $0x60] sm:$0xff]   ;;  %v1013_v21 = vld [vmem:[%s1346_s1 + $0x68] sm:$0xff]   ;;  %v30_v34 = vsub.s32 2, %v1172_v23  ;;  %v42_v36 = vsub.s32 5, %v1172_v23  ;;  %v50_v38 = vsub.s32 7, %v1172_v23 }
   0x6   :  { %915 = vmatprep.subr.bf16.mxu1 %v999_v6  ;;  %v1006_v13 = vld [vmem:[%s1346_s1 + $0x18] sm:$0xff]   ;;  %v1010_v17 = vld [vmem:[%s1346_s1 + $0x20] sm:$0xff]   ;;  %v1014_v22 = vld [vmem:[%s1346_s1 + $0x28] sm:$0xff]  }
   0x7   :  { %894 = vmatpush3.bf16.msra.mxu0 %v998_v5  ;;  %v1007_v14 = vld [vmem:[%s1346_s1 + $0xd8] sm:$0xff]   ;;  %v1011_v19 = vld [vmem:[%s1346_s1 + $0xe0] sm:$0xff]   ;;  %v1015_v24 = vld [vmem:[%s1346_s1 + $0xe8] sm:$0xff]  }
   0x8   :  { %895 = vmatprep.subr.bf16.mxu0 %v1001_v8  ;;  %v1008_v15 = vld [vmem:[%s1346_s1 + $0x98] sm:$0xff]   ;;  %v1012_v20 = vld [vmem:[%s1346_s1 + $0xa0] sm:$0xff]   ;;  %v1016_v25 = vld [vmem:[%s1346_s1 + $0xa8] sm:$0xff]  }
   0x9   :  { %916 = vmatpush3.bf16.msra.mxu1 %v1000_v7  ;;  %v1017_v26 = vld [vmem:[%s1346_s1 + $0x70] sm:$0xff]   ;;  %v1021_v33 = vld [vmem:[%s1346_s1 + $0x78] sm:$0xff]   ;;  %v1213_v40 = vld [vmem:[%s1345_s0] sm:$0xff] }
   0xa   :  { %917 = vmatprep.subr.bf16.mxu1 %v1003_v10  ;;  %v1018_v27 = vld [vmem:[%s1346_s1 + $0x30] sm:$0xff]   ;;  %v1022_v35 = vld [vmem:[%s1346_s1 + $0x38] sm:$0xff]   ;;  %v27_v41 = vrot.slane %v1213_v40, %v26_v28  ;;  %v23_v42 = vrot.slane %v1213_v40, %v22_v30  ;;  %v1025_v43 = vld [vmem:[%s1346_s1 + $0x140] sm:$0xff]   ;;  %v35_v44 = vrot.slane %v1213_v40, %v34_v32  ;;  %v31_v45 = vrot.slane %v1213_v40, %v30_v34 }
   0xb   :  { %896 = vmatpush3.bf16.msra.mxu0 %v1002_v9  ;;  %v1019_v29 = vld [vmem:[%s1346_s1 + $0xf0] sm:$0xff]   ;;  %v1023_v37 = vld [vmem:[%s1346_s1 + $0xf8] sm:$0xff]   ;;  %v1026_v46 = vld [vmem:[%s1346_s1 + $0x100] sm:$0xff]   ;;  %v43_v47 = vrot.slane %v1213_v40, %v42_v36  ;;  %v51_v48 = vrot.slane %v1213_v40, %v50_v38 }
   0xc   :  { %897 = vmatprep.subr.bf16.mxu0 %v1005_v12  ;;  %v1020_v31 = vld [vmem:[%s1346_s1 + $0xb0] sm:$0xff]   ;;  %v1024_v39 = vld [vmem:[%s1346_s1 + $0xb8] sm:$0xff]   ;;  %v66_v49 = vpack.c.bf16 %v27_v41, %v27_v41  ;;  %v65_v50 = vpack.c.bf16 %v23_v42, %v23_v42  ;;  %v68_v51 = vpack.c.bf16 %v35_v44, %v35_v44  ;;  %v1027_v52 = vld [vmem:[%s1346_s1 + $0x1c0] sm:$0xff]   ;;  %v67_v53 = vpack.c.bf16 %v31_v45, %v31_v45 }
   0xd   :  { %918 = vmatpush3.bf16.msra.mxu1 %v1004_v11  ;;  %v1028_v54 = vld [vmem:[%s1346_s1 + $0x180] sm:$0xff]   ;;  %v1029_v55 = vld [vmem:[%s1346_s1 + $0x148] sm:$0xff]   ;;  %v70_v56 = vpack.c.bf16 %v43_v47, %v43_v47  ;;  %v72_v58 = vpack.c.bf16 %v51_v48, %v51_v48  ;;  %v1033_v61 = vld [vmem:[%s1346_s1 + $0x150] sm:$0xff]  }
   0xe   :  { %919 = vmatprep.subr.bf16.mxu1 %v1007_v14  ;;  %639 = vmatprep.mubr.bf16.mxu0 %v66_v49  ;;  %v1030_v57 = vld [vmem:[%s1346_s1 + $0x108] sm:$0xff]   ;;  %v1034_v62 = vld [vmem:[%s1346_s1 + $0x110] sm:$0xff]   ;;  %v1037_v1 = vld [vmem:[%s1346_s1 + $0x158] sm:$0xff]  }
   0xf   :  { %898 = vmatpush3.bf16.msra.mxu0 %v1006_v13  ;;  %679 = vmatprep.mubr.bf16.mxu1 %v68_v51  ;;  %v1031_v59 = vld [vmem:[%s1346_s1 + $0x1c8] sm:$0xff]   ;;  %v1035_v63 = vld [vmem:[%s1346_s1 + $0x1d0] sm:$0xff]   ;;  %v1038_v2 = vld [vmem:[%s1346_s1 + $0x118] sm:$0xff]  }
  0x10   :  { %899 = vmatprep.subr.bf16.mxu0 %v1009_v16  ;;  %v1032_v60 = vld [vmem:[%s1346_s1 + $0x188] sm:$0xff]   ;;  %v1036_v0 = vld [vmem:[%s1346_s1 + $0x190] sm:$0xff]   ;;  %v1039_v3 = vld [vmem:[%s1346_s1 + $0x1d8] sm:$0xff]  }
  0x11   :  { %920 = vmatpush3.bf16.msra.mxu1 %v1008_v15  ;;  %v1040_v4 = vld [vmem:[%s1346_s1 + $0x198] sm:$0xff]   ;;  %v1041_v5 = vld [vmem:[%s1346_s1 + $0x160] sm:$0xff]   ;;  %v1045_v9 = vld [vmem:[%s1346_s1 + $0x168] sm:$0xff]   ;;  %v38_v15 = vsub.s32 4, %v1172_v23 }
  0x12   :  { %921 = vmatprep.subr.bf16.mxu1 %v1011_v19  ;;  %v1042_v6 = vld [vmem:[%s1346_s1 + $0x120] sm:$0xff]   ;;  %v1046_v10 = vld [vmem:[%s1346_s1 + $0x128] sm:$0xff]   ;;  %v1049_v13 = vld [vmem:[%s1346_s1 + $0x170] sm:$0xff]  }
  0x13   :  { %900 = vmatpush3.bf16.msra.mxu0 %v1010_v17  ;;  %v1043_v7 = vld [vmem:[%s1346_s1 + $0x1e0] sm:$0xff]   ;;  %v1047_v11 = vld [vmem:[%s1346_s1 + $0x1e8] sm:$0xff]   ;;  %v1050_v14 = vld [vmem:[%s1346_s1 + $0x130] sm:$0xff]   ;;  %v46_v17 = vsub.s32 6, %v1172_v23 }
  0x14   :  { %901 = vmatprep.subr.bf16.mxu0 %v1013_v21  ;;  %v1044_v8 = vld [vmem:[%s1346_s1 + $0x1a0] sm:$0xff]   ;;  %v1048_v12 = vld [vmem:[%s1346_s1 + $0x1a8] sm:$0xff]   ;;  %v1051_v16 = vld [vmem:[%s1346_s1 + $0x1f0] sm:$0xff]   ;;  %v39_v21 = vrot.slane %v1213_v40, %v38_v15 }
  0x15   :  { %922 = vmatpush3.bf16.msra.mxu1 %v1012_v20  ;;  %v1052_v18 = vld [vmem:[%s1346_s1 + $0x1b0] sm:$0xff]   ;;  %v1053_v19 = vld [vmem:[%s1346_s1 + $0x178] sm:$0xff]   ;;  %v47_v23 = vrot.slane %v1213_v40, %v46_v17 }
  0x16   :  { %923 = vmatprep.subr.bf16.mxu1 %v1015_v24  ;;  %v1054_v20 = vld [vmem:[%s1346_s1 + $0x138] sm:$0xff]  }
  0x17   :  { %902 = vmatpush3.bf16.msra.mxu0 %v1014_v22  ;;  %v1055_v22 = vld [vmem:[%s1346_s1 + $0x1f8] sm:$0xff]  }
  0x18   :  { %903 = vmatprep.subr.bf16.mxu0 %v1017_v26  ;;  %v1056_v24 = vld [vmem:[%s1346_s1 + $0x1b8] sm:$0xff]  }
  0x19   :  { %924 = vmatpush3.bf16.msra.mxu1 %v1016_v25  ;;  %v69_v25 = vpack.c.bf16 %v39_v21, %v39_v21 }
  0x1a   :  { %925 = vmatprep.subr.bf16.mxu1 %v1019_v29 }
  0x1b   :  { %904 = vmatpush3.bf16.msra.mxu0 %v1018_v27 }
  0x1c   :  { %905 = vmatprep.subr.bf16.mxu0 %v1021_v33 }
  0x1d   :  { %926 = vmatpush3.bf16.msra.mxu1 %v1020_v31 }
  0x1e   :  { %927 = vmatprep.subr.bf16.mxu1 %v1023_v37 }
  0x1f   :  { %906 = vmatpush3.bf16.msra.mxu0 %v1022_v35 }
  0x20   :  { %935 = vmatprep.subr.bf16.mxu0 %v1025_v43 }
  0x21   :  { %928 = vmatpush3.bf16.msra.mxu1 %v1024_v39 }
  0x22   :  { %640 = vmatmul.mubr.bf16.vlgmr.msra.gmra.mrb[0].mxu0 %v65_v50  ;;  %957 = vmatprep.subr.bf16.mxu1 %v1027_v52 }
  0x23   :  { %936 = vmatpush3.bf16.msra.mxu0 %v1026_v46  ;;  %719 = vmatprep.mubr.bf16.mxu0 %v70_v56 }
  0x24   :  { %680 = vmatmul.mubr.bf16.vlgmr.msra.gmra.mrb[0].mxu1 %v67_v53  ;;  %937 = vmatprep.subr.bf16.mxu0 %v1029_v55 }
  0x25   :  { %958 = vmatpush3.bf16.msra.mxu1 %v1028_v54  ;;  %759 = vmatprep.mubr.bf16.mxu1 %v72_v58 }
  0x26   :  { %959 = vmatprep.subr.bf16.mxu1 %v1031_v59 }
  0x27   :  { %938 = vmatpush3.bf16.msra.mxu0 %v1030_v57 }
  0x28   :  { %939 = vmatprep.subr.bf16.mxu0 %v1033_v61 }
  0x29   :  { %960 = vmatpush3.bf16.msra.mxu1 %v1032_v60 }
  0x2a   :  { %961 = vmatprep.subr.bf16.mxu1 %v1035_v63 }
  0x2b   :  { %940 = vmatpush3.bf16.msra.mxu0 %v1034_v62 }
  0x2c   :  { %941 = vmatprep.subr.bf16.mxu0 %v1037_v1 }
  0x2d   :  { %962 = vmatpush3.bf16.msra.mxu1 %v1036_v0 }
  0x2e   :  { %963 = vmatprep.subr.bf16.mxu1 %v1039_v3 }
  0x2f   :  { %942 = vmatpush3.bf16.msra.mxu0 %v1038_v2 }
  0x30   :  { %943 = vmatprep.subr.bf16.mxu0 %v1041_v5 }
  0x31   :  { %964 = vmatpush3.bf16.msra.mxu1 %v1040_v4 }
  0x32   :  { %965 = vmatprep.subr.bf16.mxu1 %v1043_v7 }
  0x33   :  { %944 = vmatpush3.bf16.msra.mxu0 %v1042_v6 }
  0x34   :  { %945 = vmatprep.subr.bf16.mxu0 %v1045_v9 }
  0x35   :  { %966 = vmatpush3.bf16.msra.mxu1 %v1044_v8 }
  0x36   :  { %967 = vmatprep.subr.bf16.mxu1 %v1047_v11 }
  0x37   :  { %946 = vmatpush3.bf16.msra.mxu0 %v1046_v10 }
  0x38   :  { %947 = vmatprep.subr.bf16.mxu0 %v1049_v13 }
  0x39   :  { %968 = vmatpush3.bf16.msra.mxu1 %v1048_v12 }
  0x3a   :  { %969 = vmatprep.subr.bf16.mxu1 %v1051_v16 }
  0x3b   :  { %948 = vmatpush3.bf16.msra.mxu0 %v1050_v14 }
  0x3c   :  { %949 = vmatprep.subr.bf16.mxu0 %v1053_v19 }
  0x3d   :  { %970 = vmatpush3.bf16.msra.mxu1 %v1052_v18 }
  0x3e   :  { %971 = vmatprep.subr.bf16.mxu1 %v1055_v22 }
  0x3f   :  { %8 = vsyncpa [#allocation3], 0  ;;  %950 = vmatpush3.bf16.msra.mxu0 %v1054_v20  ;;  %v71_v26 = vpack.c.bf16 %v47_v23, %v47_v23  ;;  %v1057_v27 = vld [vmem:[%s1346_s1 + $0x200] sm:$0xff]   ;;  %v1083_v28 = vmov 0.0   ;;  %v1058_v29 = vld [vmem:[%s1346_s1 + $0x208] sm:$0xff]   ;;  %vm1084_vm0 = vmmov 0  }
  0x40   :  { %982 = vmatprep.subr.bf16.mxu0 %v1083_v28  ;;  %v823_v30 = vld [vmem:[%s1345_s0 + $0x8] ss:$0 sm:$0xff]  ;;  %vm603_vm1 = vcmask 261120   ;;  %v206_v33 = vld [vmem:[%s1347_s2] sm:$0x1]  ;;  %s1085_s0 = smov [#allocation2]  }
  0x41   :  { %972 = vmatpush3.bf16.msra.mxu1 %v1056_v24  ;;  %v73_v31 = vpack.c.bf16 %v823_v30, %v823_v30  ;;  %s815_s1 = sshll.u32 %s1085_s0, 4  ;;  %vm807_vm2 = vcmask 352256   ;;  %s816_s1 = int_to_ptr.vmem [resolvable:$true] %s815_s1 }
  0x42   :  { %720 = vmatmul.mubr.bf16.vlgmr.msra.gmra.mrb[4].mxu0 %v69_v25  ;;  %s1059_s2 = scalar_lea.vmem %s816_s1, 16  ;;  %s1063_s15 = scalar_lea.vmem %s816_s1, 32 }
  0x43   :  { %983 = vmatpush3.bf16.msra.mxu0 %v1057_v27  ;;  %986 = vmatprep.mubr.msk.bf16.mxu0 %vm1084_vm0, %v1083_v28  ;;  %p1060_p0 = scmp.ne.s32.totalorder %s816_s1, %s1059_s2  ;;  %p1064_p1 = scmp.lt.s32.totalorder %s816_s1, %s816_s1 }
  0x44   :  { %760 = vmatmul.mubr.bf16.vlgmr.msra.gmra.mrb[4].mxu1 %v71_v26  ;;  %984 = vmatprep.subr.bf16.mxu0 %v1083_v28  ;;  %p1065_p2 = scmp.lt.s32.totalorder %s1063_s15, %s1059_s2 }
  0x46   :  { %p1066_p3 = por %p1065_p2, %p1064_p1 }
  0x47   :  { %985 = vmatpush3.bf16.msra.mxu0 %v1058_v29 }
  0x48   :  { %p1067_p4 = pnand %p1066_p3, %p1060_p0 }
  0x4a   :  { %987 = vmatmul.mubr.msk.bf16.vlgmr.msra.gmra.mrb[8].mxu0 %vm603_vm1, %v73_v31 }
  0xf5   :  { %v907_v32 = vpop.f32.mrb[0].mxu0 }
  0xf6   :  { %v908_v34 = vpop.f32.mrb[1].mxu0 }
  0xf7   :  { %v929_v35 = vpop.f32.mrb[0].mxu1  ;;  %v909_v36 = vadd.f32 %v908_v34, %v907_v32  ;;  %v910_v37 = vpop.f32.mrb[2].mxu0 }
  0xf8   :  { %v930_v38 = vpop.f32.mrb[1].mxu1  ;;  %v911_v39 = vpop.f32.mrb[3].mxu0 }
  0xf9   :  { %v931_v40 = vadd.f32 %v930_v38, %v929_v35  ;;  %v932_v41 = vpop.f32.mrb[2].mxu1  ;;  %v642_v42 = vadd.f32 %v909_v36, %v206_v33 }
  0xfa   :  { %v933_v43 = vpop.f32.mrb[3].mxu1 }
  0xfb   :  { %v682_v44 = vadd.f32 %v931_v40, %v642_v42 }
 0x115   :  { %v951_v45 = vpop.f32.mrb[4].mxu0 }
 0x116   :  { %v952_v46 = vpop.f32.mrb[5].mxu0 }
 0x117   :  { %v973_v47 = vpop.f32.mrb[4].mxu1  ;;  %v953_v48 = vadd.f32 %v952_v46, %v951_v45  ;;  %v954_v49 = vpop.f32.mrb[6].mxu0 }
 0x118   :  { %v974_v50 = vpop.f32.mrb[5].mxu1  ;;  %v955_v52 = vpop.f32.mrb[7].mxu0 }
 0x119   :  { %v975_v51 = vadd.f32 %v974_v50, %v973_v47  ;;  %v976_v53 = vpop.f32.mrb[6].mxu1  ;;  %v722_v54 = vadd.f32 %v953_v48, %v682_v44 }
 0x11a   :  { %v977_v55 = vpop.f32.mrb[7].mxu1 }
 0x11b   :  { %v762_v56 = vadd.f32 %v975_v51, %v722_v54 }
 0x11d   :  { %v801_v57 = vpop.f32.mrb[8].mxu0 }
 0x11e   :  { %v802_v58 = vadd.f32 %v801_v57, %v762_v56  ;;  %v988_v59 = vpop.f32.mrb[9].mxu0 }
 0x11f   :  { %v804_v60 = vpop.f32.mrb[10].mxu0 }
 0x120   :  { %v989_v61 = vpop.f32.mrb[11].mxu0  ;;  %808 = vst.msk [vmem:[#allocation2] sm:$0x1] %vm807_vm2, %v802_v58 }
 0x121   :  { %1070 = shalt.err (!%p1067_p4)
}
 0x122   :  { %s1071_s18 = scalar_lea.hbm %s1348_s3, 16 }
 0x123   :  { %p1072_p5 = scmp.ne.s32.totalorder %s1348_s3, %s1071_s18  ;;  %p1075_p6 = scmp.lt.u32.totalorder %s1071_s18, %s1348_s3 }
 0x125   :  { %p1077_p7 = pnand %p1075_p6, %p1072_p5 }
 0x127   :  { %1080 = shalt.err (!%p1077_p7)
}
 0x128   :  { %818 = dma.vmem_to_hbm [thread:$0]  %s816_s1, 16, %s1348_s3, [#allocation3]  }
 0x129   :  { %1081 = dma.done.wait [#allocation3], 16  }
 0x12a   :  { %1082 = vsyncadd [#allocation3], 4294967280 }
 0x12b   :  { %822 = vsyncpa [#allocation3], 1 }

</bundles_post_ra>
